<compile_context>
chip_gen: v7x
topology: tpu7x:2x2x1
jax: 0.10.0
libtpu: 0.0.40
codegen_flags: <defaults>
</compile_context>

<pallas_src>
import jax
import jax.numpy as jnp
import numpy as np
from jax.experimental import pallas as pl
from jax.experimental.pallas import tpu as pltpu


# ----------------------------------------------------------------------------
# Kernel: one block of `tb` tree nodes, each with up to MAX_C (zero-padded)
# children.  Gate order inside the fused 4*M lane dimension is [i | o | u | f].
# ----------------------------------------------------------------------------
def _childsum_level_kernel(x_ref, ch_ref, cc_ref,
                           wx_ref, bx_ref, wh_ref, bh_ref,
                           out_ref):
    tb, max_c, M = ch_ref.shape

    X = x_ref[...]                                   # (tb, in_dim)
    H = ch_ref[...]                                  # (tb, max_c, M) child hidden
    C = cc_ref[...]                                  # (tb, max_c, M) child cell

    # ---- fused x-side gates: one (tb, 4M) lane-dense matmul -----------------
    Xg = jnp.dot(X, wx_ref[...], preferred_element_type=jnp.float32)
    Z = Xg + bx_ref[...] + bh_ref[...]               # fold BOTH biases in once

    # ---- fused h-side gates: one matmul over all children of all nodes ------
    Hf = H.reshape(tb * max_c, M)
    Gf = jnp.dot(Hf, wh_ref[...], preferred_element_type=jnp.float32)
    G = Gf.reshape(tb, max_c, 4 * M)                 # (tb, max_c, 4M)

    # child-sum for i/o/u: sum of per-child projections == projection of sum.
    # Zero-padded child rows contribute 0.
    Hg = jnp.sum(G, axis=1)                          # (tb, 4M)

    i_g = jax.nn.sigmoid(Z[:, 0 * M:1 * M] + Hg[:, 0 * M:1 * M])
    o_g = jax.nn.sigmoid(Z[:, 1 * M:2 * M] + Hg[:, 1 * M:2 * M])
    u_g = jnp.tanh(Z[:, 2 * M:3 * M] + Hg[:, 2 * M:3 * M])

    # per-child forget gate: sigmoid(fh(child_h_k) + fx(x))
    f = jax.nn.sigmoid(G[:, :, 3 * M:] + Z[:, None, 3 * M:])   # (tb, max_c, M)
    csum = jnp.sum(f * C, axis=1)                    # padded rows: child_c = 0

    c = i_g * u_g + csum                             # (tb, M)
    h = o_g * jnp.tanh(c)                            # (tb, M)

    # ---- lane-dense packed writeback: [c | h | 0 | 0] -> (tb, 128) -----------
    out_ref[...] = jnp.concatenate(
        [c, h, jnp.zeros_like(c), jnp.zeros_like(h)], axis=-1)


# ----------------------------------------------------------------------------
# Wrapper: one pallas_call per tree level (frontier).  Weights stay resident
# across the node grid axis (constant index_map); node axis is "parallel".
# ----------------------------------------------------------------------------
def childsum_level_forward(x, child_h, child_c,
                           wx_all, bx_all, wh_all, bh_all, *, tb=8):
    nb, in_dim = x.shape
    _, max_c, M = child_h.shape
    assert nb % tb == 0, "node count must be padded to a multiple of tb"

    out = pl.pallas_call(
        _childsum_level_kernel,
        out_shape=jax.ShapeDtypeStruct((nb, 4 * M), jnp.float32),
        grid_spec=pltpu.PrefetchScalarGridSpec(
            num_scalar_prefetch=0,
            grid=(nb // tb,),
            in_specs=[
                pl.BlockSpec((tb, in_dim), lambda i: (i, 0)),        # x
                pl.BlockSpec((tb, max_c, M), lambda i: (i, 0, 0)),   # child_h
                pl.BlockSpec((tb, max_c, M), lambda i: (i, 0, 0)),   # child_c
                pl.BlockSpec((in_dim, 4 * M), lambda i: (0, 0)),     # Wx (resident)
                pl.BlockSpec((1, 4 * M), lambda i: (0, 0)),          # bx (resident)
                pl.BlockSpec((M, 4 * M), lambda i: (0, 0)),          # Wh (resident)
                pl.BlockSpec((1, 4 * M), lambda i: (0, 0)),          # bh (resident)
            ],
            out_specs=pl.BlockSpec((tb, 4 * M), lambda i: (i, 0)),
        ),
        compiler_params=pltpu.CompilerParams(
            dimension_semantics=("parallel",)),      # v7x: split nodes over 2 TCs
    )(x, child_h, child_c, wx_all, bx_all, wh_all, bh_all)

    return out[:, :M], out[:, M:2 * M]               # c, h


# ----------------------------------------------------------------------------
# Host-side tree driver (the recursion in ChildSumTreeLSTM.forward is
# data-dependent host control flow).  Nodes are processed level by level,
# bottom-up; each level is ONE batched pallas_call.
# ----------------------------------------------------------------------------
def build_levels(children):
    n = len(children)
    depth = [None] * n

    def d(i):
        if depth[i] is None:
            depth[i] = 0 if not children[i] else 1 + max(d(c) for c in children[i])
        return depth[i]

    for i in range(n):
        d(i)
    return [[i for i in range(n) if depth[i] == lvl] for lvl in range(max(depth) + 1)]


def tree_forward_pallas(children, inputs, params, *, max_children, tb=8):
    num_nodes, in_dim = inputs.shape
    M = params["wh"].shape[-1]

    # Fuse weights once (order [i, o, u, f]); stored (in_features, out_features).
    wx_all = jnp.transpose(params["wx"], (1, 0, 2)).reshape(in_dim, 4 * M)
    bx_all = params["bx"].reshape(1, 4 * M)
    wh_all = jnp.transpose(params["wh"], (1, 0, 2)).reshape(M, 4 * M)
    bh_all = params["bh"].reshape(1, 4 * M)

    c_all = jnp.zeros((num_nodes, M), jnp.float32)
    h_all = jnp.zeros((num_nodes, M), jnp.float32)

    for level in build_levels(children):
        nb = len(level)
        nb_pad = ((nb + tb - 1) // tb) * tb
        node_ids = np.asarray(level, dtype=np.int32)

        x_lvl = jnp.zeros((nb_pad, in_dim), jnp.float32)
        x_lvl = x_lvl.at[:nb].set(inputs[node_ids])

        # Gather zero-padded child states (zeros also cover the leaf case,
        # matching get_child_states' zero (1, 1, mem_dim) leaf state).
        child_idx = np.zeros((nb_pad, max_children), dtype=np.int32)
        child_msk = np.zeros((nb_pad, max_children, 1), dtype=np.float32)
        for r, nid in enumerate(level):
            for k, cid in enumerate(children[nid]):
                child_idx[r, k] = cid
                child_msk[r, k, 0] = 1.0
        idx = jnp.asarray(child_idx)
        msk = jnp.asarray(child_msk)
        ch = jnp.take(h_all, idx, axis=0) * msk
        cc = jnp.take(c_all, idx, axis=0) * msk

        c_lvl, h_lvl = childsum_level_forward(
            x_lvl, ch, cc, wx_all, bx_all, wh_all, bh_all, tb=tb)

        c_all = c_all.at[jnp.asarray(node_ids)].set(c_lvl[:nb])
        h_all = h_all.at[jnp.asarray(node_ids)].set(h_lvl[:nb])

    return c_all, h_all


# ----------------------------------------------------------------------------
# Pure-JAX reference reproducing the PyTorch node_forward recursion exactly.
# ----------------------------------------------------------------------------
def tree_forward_ref(children, inputs, params):
    num_nodes, _ = inputs.shape
    M = params["wh"].shape[-1]
    Wix, Wox, Wux, Wfx = params["wx"]
    bix, box, bux, bfx = params["bx"]
    Wih, Woh, Wuh, Wfh = params["wh"]
    bih, boh, buh, bfh = params["bh"]

    c_all = [None] * num_nodes
    h_all = [None] * num_nodes

    def node_forward(x, child_c, child_h):
        h_sum = jnp.sum(child_h, axis=0)
        i = jax.nn.sigmoid(x @ Wix + bix + h_sum @ Wih + bih)
        o = jax.nn.sigmoid(x @ Wox + box + h_sum @ Woh + boh)
        u = jnp.tanh(x @ Wux + bux + h_sum @ Wuh + buh)
        fx = x @ Wfx + bfx
        f = jax.nn.sigmoid(child_h @ Wfh + bfh + fx)
        fc = f * child_c
        c = i * u + jnp.sum(fc, axis=0)
        h = o * jnp.tanh(c)
        return c, h

    def rec(idx):
        for cid in children[idx]:
            rec(cid)
        if children[idx]:
            cc = jnp.stack([c_all[cid] for cid in children[idx]])
            ch = jnp.stack([h_all[cid] for cid in children[idx]])
        else:
            cc = jnp.zeros((1, M), jnp.float32)
            ch = jnp.zeros((1, M), jnp.float32)
        c, h = node_forward(inputs[idx], cc, ch)
        c_all[idx] = c
        h_all[idx] = h

    rec(0)
    return jnp.stack(c_all), jnp.stack(h_all)


def make_params(key, in_dim, mem_dim):
    ks = jax.random.split(key, 4)
    s = 0.1
    return {
        # stacked [i, o, u, f]; weights stored (in_features, out_features): y = x @ W + b
        "wx": s * jax.random.normal(ks[0], (4, in_dim, mem_dim), jnp.float32),
        "bx": s * jax.random.normal(ks[1], (4, mem_dim), jnp.float32),
        "wh": s * jax.random.normal(ks[2], (4, mem_dim, mem_dim), jnp.float32),
        "bh": s * jax.random.normal(ks[3], (4, mem_dim), jnp.float32),
    }


if __name__ == "__main__":
    in_dim, mem_dim, max_children, tb = 32, 32, 4, 8

    # Small deterministic tree (node 0 = root); leaves have empty child lists.
    children = [[1, 2, 3], [4, 5], [6, 7, 8], [], [9, 10], [], [], [], [], [], []]
    num_nodes = len(children)

    key = jax.random.PRNGKey(0)
    ki, kp = jax.random.split(key)
    inputs = jax.random.normal(ki, (num_nodes, in_dim), jnp.float32)
    params = make_params(kp, in_dim, mem_dim)

    c_k, h_k = tree_forward_pallas(children, inputs, params,
                                   max_children=max_children, tb=tb)
    jax.block_until_ready((c_k, h_k))

    c_r, h_r = tree_forward_ref(children, inputs, params)
    np.testing.assert_allclose(np.asarray(c_k), np.asarray(c_r), atol=2e-5, rtol=1e-4)
    np.testing.assert_allclose(np.asarray(h_k), np.asarray(h_r), atol=2e-5, rtol=1e-4)

    # TODO(synk): self.output_module / self.criterion / vocab_output are external
    # modules not defined in this spec; the kernel covers node_forward (the
    # per-node compute hot path) driven level-wise by the host-side tree walk.
    print("KERNEL_OK")
</pallas_src>

<mosaic_0001>
module attributes {stable_mosaic.version = 11 : i64} {
  func.func @_childsum_level_kernel(%arg0: i32, %arg1: memref<8x32xf32, #tpu.memory_space<vmem>>, %arg2: memref<8x4x32xf32, #tpu.memory_space<vmem>>, %arg3: memref<8x4x32xf32, #tpu.memory_space<vmem>>, %arg4: memref<32x128xf32, #tpu.memory_space<vmem>>, %arg5: memref<1x128xf32, #tpu.memory_space<vmem>>, %arg6: memref<32x128xf32, #tpu.memory_space<vmem>>, %arg7: memref<1x128xf32, #tpu.memory_space<vmem>>, %arg8: memref<8x128xf32, #tpu.memory_space<vmem>>) attributes {dimension_semantics = [#tpu.dimension_semantics<parallel>], iteration_bounds = array<i64: 1>, scalar_prefetch = 0 : i64, scratch_operands = 0 : i64, tpu.core_type = #tpu.core_type<tc>, window_params = [{transform_indices = @transform_0, window_bounds = array<i64: 8, 32>}, {transform_indices = @transform_1, window_bounds = array<i64: 8, 4, 32>}, {transform_indices = @transform_2, window_bounds = array<i64: 8, 4, 32>}, {pipeline_mode = #tpu.pipeline_mode<synchronous>, transform_indices = @transform_3, window_bounds = array<i64: 32, 128>}, {pipeline_mode = #tpu.pipeline_mode<synchronous>, transform_indices = @transform_4, window_bounds = array<i64: 1, 128>}, {pipeline_mode = #tpu.pipeline_mode<synchronous>, transform_indices = @transform_5, window_bounds = array<i64: 32, 128>}, {pipeline_mode = #tpu.pipeline_mode<synchronous>, transform_indices = @transform_6, window_bounds = array<i64: 1, 128>}, {transform_indices = @transform_7, window_bounds = array<i64: 8, 128>}]} {
    %c0 = arith.constant 0 : index
    %c0_0 = arith.constant 0 : index
    %0 = vector.load %arg1[%c0, %c0_0] : memref<8x32xf32, #tpu.memory_space<vmem>>, vector<8x32xf32>
    %c0_1 = arith.constant 0 : index
    %c0_2 = arith.constant 0 : index
    %c0_3 = arith.constant 0 : index
    %1 = vector.load %arg2[%c0_1, %c0_2, %c0_3] : memref<8x4x32xf32, #tpu.memory_space<vmem>>, vector<8x4x32xf32>
    %c0_4 = arith.constant 0 : index
    %c0_5 = arith.constant 0 : index
    %c0_6 = arith.constant 0 : index
    %2 = vector.load %arg3[%c0_4, %c0_5, %c0_6] : memref<8x4x32xf32, #tpu.memory_space<vmem>>, vector<8x4x32xf32>
    %c0_7 = arith.constant 0 : index
    %c0_8 = arith.constant 0 : index
    %3 = vector.load %arg4[%c0_7, %c0_8] : memref<32x128xf32, #tpu.memory_space<vmem>>, vector<32x128xf32>
    %cst = arith.constant dense<0.000000e+00> : vector<8x128xf32>
    %4 = tpu.matmul %0, %3, %cst {dimension_numbers = #tpu.dot_dimension_numbers<[1], [0], [0], [1], [0, 0, 1, 1], [], []>} : vector<8x32xf32>, vector<32x128xf32>, vector<8x128xf32> -> vector<8x128xf32>
    %c0_9 = arith.constant 0 : index
    %c0_10 = arith.constant 0 : index
    %5 = vector.load %arg5[%c0_9, %c0_10] : memref<1x128xf32, #tpu.memory_space<vmem>>, vector<1x128xf32>
    %6 = vector.broadcast %5 : vector<1x128xf32> to vector<8x128xf32>
    %7 = arith.addf %4, %6 : vector<8x128xf32>
    %c0_11 = arith.constant 0 : index
    %c0_12 = arith.constant 0 : index
    %8 = vector.load %arg7[%c0_11, %c0_12] : memref<1x128xf32, #tpu.memory_space<vmem>>, vector<1x128xf32>
    %9 = vector.broadcast %8 : vector<1x128xf32> to vector<8x128xf32>
    %10 = arith.addf %7, %9 : vector<8x128xf32>
    %11 = vector.shape_cast %1 : vector<8x4x32xf32> to vector<32x32xf32>
    %c0_13 = arith.constant 0 : index
    %c0_14 = arith.constant 0 : index
    %12 = vector.load %arg6[%c0_13, %c0_14] : memref<32x128xf32, #tpu.memory_space<vmem>>, vector<32x128xf32>
    %cst_15 = arith.constant dense<0.000000e+00> : vector<32x128xf32>
    %13 = tpu.matmul %11, %12, %cst_15 {dimension_numbers = #tpu.dot_dimension_numbers<[1], [0], [0], [1], [0, 0, 1, 1], [], []>} : vector<32x32xf32>, vector<32x128xf32>, vector<32x128xf32> -> vector<32x128xf32>
    %14 = vector.shape_cast %13 : vector<32x128xf32> to vector<8x4x128xf32>
    %cst_16 = arith.constant dense<0.000000e+00> : vector<8x128xf32>
    %15 = vector.multi_reduction <add>, %14, %cst_16 [1] : vector<8x4x128xf32> to vector<8x128xf32>
    %16 = vector.extract_strided_slice %10 {offsets = [0, 0], sizes = [8, 32], strides = [1, 1]} : vector<8x128xf32> to vector<8x32xf32>
    %17 = vector.extract_strided_slice %15 {offsets = [0, 0], sizes = [8, 32], strides = [1, 1]} : vector<8x128xf32> to vector<8x32xf32>
    %18 = arith.addf %16, %17 : vector<8x32xf32>
    %19 = arith.negf %18 : vector<8x32xf32>
    %20 = math.exp %19 : vector<8x32xf32>
    %cst_17 = arith.constant 1.000000e+00 : f32
    %21 = vector.broadcast %cst_17 : f32 to vector<8x32xf32>
    %22 = arith.addf %21, %20 : vector<8x32xf32>
    %23 = arith.divf %21, %22 : vector<8x32xf32>
    %24 = vector.extract_strided_slice %10 {offsets = [0, 32], sizes = [8, 32], strides = [1, 1]} : vector<8x128xf32> to vector<8x32xf32>
    %25 = vector.extract_strided_slice %15 {offsets = [0, 32], sizes = [8, 32], strides = [1, 1]} : vector<8x128xf32> to vector<8x32xf32>
    %26 = arith.addf %24, %25 : vector<8x32xf32>
    %27 = arith.negf %26 : vector<8x32xf32>
    %28 = math.exp %27 : vector<8x32xf32>
    %cst_18 = arith.constant 1.000000e+00 : f32
    %29 = vector.broadcast %cst_18 : f32 to vector<8x32xf32>
    %30 = arith.addf %29, %28 : vector<8x32xf32>
    %31 = arith.divf %29, %30 : vector<8x32xf32>
    %32 = vector.extract_strided_slice %10 {offsets = [0, 64], sizes = [8, 32], strides = [1, 1]} : vector<8x128xf32> to vector<8x32xf32>
    %33 = vector.extract_strided_slice %15 {offsets = [0, 64], sizes = [8, 32], strides = [1, 1]} : vector<8x128xf32> to vector<8x32xf32>
    %34 = arith.addf %32, %33 : vector<8x32xf32>
    %35 = math.tanh %34 : vector<8x32xf32>
    %36 = vector.extract_strided_slice %14 {offsets = [0, 0, 96], sizes = [8, 4, 32], strides = [1, 1, 1]} : vector<8x4x128xf32> to vector<8x4x32xf32>
    %37 = vector.extract_strided_slice %10 {offsets = [0, 96], sizes = [8, 32], strides = [1, 1]} : vector<8x128xf32> to vector<8x32xf32>
    %38 = vector.shape_cast %37 : vector<8x32xf32> to vector<8x1x32xf32>
    %39 = vector.broadcast %38 : vector<8x1x32xf32> to vector<8x4x32xf32>
    %40 = arith.addf %36, %39 : vector<8x4x32xf32>
    %41 = arith.negf %40 : vector<8x4x32xf32>
    %42 = math.exp %41 : vector<8x4x32xf32>
    %cst_19 = arith.constant 1.000000e+00 : f32
    %43 = vector.broadcast %cst_19 : f32 to vector<8x4x32xf32>
    %44 = arith.addf %43, %42 : vector<8x4x32xf32>
    %45 = arith.divf %43, %44 : vector<8x4x32xf32>
    %46 = arith.mulf %45, %2 : vector<8x4x32xf32>
    %cst_20 = arith.constant dense<0.000000e+00> : vector<8x32xf32>
    %47 = vector.multi_reduction <add>, %46, %cst_20 [1] : vector<8x4x32xf32> to vector<8x32xf32>
    %48 = arith.mulf %23, %35 : vector<8x32xf32>
    %49 = arith.addf %48, %47 : vector<8x32xf32>
    %50 = math.tanh %49 : vector<8x32xf32>
    %51 = arith.mulf %31, %50 : vector<8x32xf32>
    %cst_21 = arith.constant 0.000000e+00 : f32
    %52 = vector.broadcast %cst_21 : f32 to vector<8x32xf32>
    %cst_22 = arith.constant 0.000000e+00 : f32
    %53 = vector.broadcast %cst_22 : f32 to vector<8x32xf32>
    %54 = tpu.concatenate %49, %51, %52, %53 in 1 : vector<8x32xf32>, vector<8x32xf32>, vector<8x32xf32>, vector<8x32xf32> -> vector<8x128xf32>
    %c0_23 = arith.constant 0 : index
    %c0_24 = arith.constant 0 : index
    %55 = vector.load %arg8[%c0_23, %c0_24] : memref<8x128xf32, #tpu.memory_space<vmem>>, vector<8x128xf32>
    tpu.vector_store %arg8[%c0_23, %c0_24], %54 {strides = array<i32>} : memref<8x128xf32, #tpu.memory_space<vmem>>, vector<8x128xf32>,
    return
  }
  func.func @transform_0(%arg0: i32) -> (i32, i32) {
    %c0_i32 = arith.constant 0 : i32
    %c0_i32_0 = arith.constant 0 : i32
    return %arg0, %c0_i32 : i32, i32
  }
  func.func @transform_1(%arg0: i32) -> (i32, i32, i32) {
    %c0_i32 = arith.constant 0 : i32
    %c0_i32_0 = arith.constant 0 : i32
    %c0_i32_1 = arith.constant 0 : i32
    return %arg0, %c0_i32, %c0_i32_0 : i32, i32, i32
  }
  func.func @transform_2(%arg0: i32) -> (i32, i32, i32) {
    %c0_i32 = arith.constant 0 : i32
    %c0_i32_0 = arith.constant 0 : i32
    %c0_i32_1 = arith.constant 0 : i32
    return %arg0, %c0_i32, %c0_i32_0 : i32, i32, i32
  }
  func.func @transform_3(%arg0: i32) -> (i32, i32) {
    %c0_i32 = arith.constant 0 : i32
    %c0_i32_0 = arith.constant 0 : i32
    %c0_i32_1 = arith.constant 0 : i32
    return %c0_i32, %c0_i32_0 : i32, i32
  }
  func.func @transform_4(%arg0: i32) -> (i32, i32) {
    %c0_i32 = arith.constant 0 : i32
    %c0_i32_0 = arith.constant 0 : i32
    %c0_i32_1 = arith.constant 0 : i32
    return %c0_i32, %c0_i32_0 : i32, i32
  }
  func.func @transform_5(%arg0: i32) -> (i32, i32) {
    %c0_i32 = arith.constant 0 : i32
    %c0_i32_0 = arith.constant 0 : i32
    %c0_i32_1 = arith.constant 0 : i32
    return %c0_i32, %c0_i32_0 : i32, i32
  }
  func.func @transform_6(%arg0: i32) -> (i32, i32) {
    %c0_i32 = arith.constant 0 : i32
    %c0_i32_0 = arith.constant 0 : i32
    %c0_i32_1 = arith.constant 0 : i32
    return %c0_i32, %c0_i32_0 : i32, i32
  }
  func.func @transform_7(%arg0: i32) -> (i32, i32) {
    %c0_i32 = arith.constant 0 : i32
    %c0_i32_0 = arith.constant 0 : i32
    return %arg0, %c0_i32 : i32, i32
  }
}

</mosaic_0001>

<bundles_post_ra>
// kernel: tpu_custom_call.1
= control target key start
LH: loop header
LB: loop body
LE: loop exit
PB: predicated region body
PF: predicated region fallthrough
CT: control target
= control target key end

     0   :  { %12 = vsyncpa [#allocation3], 0  ;;  %s1210_s0 = inlined_call_operand.hbm [shape: f32[8,32], index: 0, kind: input, shape index: {}]   ;;  %s1211_s1 = inlined_call_operand.hbm [shape: f32[8,4,32], index: 1, kind: input, shape index: {}]   ;;  %s1212_s2 = inlined_call_operand.hbm [shape: f32[8,4,32], index: 2, kind: input, shape index: {}]   ;;  %s1213_s3 = inlined_call_operand.hbm [shape: f32[32,128], index: 3, kind: input, shape index: {}]   ;;  %s1214_s4 = inlined_call_operand.vmem [shape: f32[1,128], index: 4, kind: input, shape index: {}]   ;;  %s1215_s5 = inlined_call_operand.hbm [shape: f32[32,128], index: 5, kind: input, shape index: {}]   ;;  %s1216_s6 = inlined_call_operand.vmem [shape: f32[1,128], index: 6, kind: input, shape index: {}]   ;;  %s1217_s7 = inlined_call_operand.hbm [shape: f32[8,128], index: 7, kind: output, shape index: {}]  }
   0x1   :  { %13 = vsyncpa [#allocation6], 0 }
   0x2   :  { %14 = vsyncpa [#allocation9], 0 }
   0x3   :  { %15 = vsyncpa [#allocation4], 0  ;;  %s976_s24 = smov [#allocation5]   ;;  %s836_s28 = scalar_lea.hbm %s1211_s1, 512 }
   0x4   :  { %s31_s25 = sshll.u32 %s976_s24, 4  ;;  %p837_p0 = scmp.ne.s32.totalorder %s1211_s1, %s836_s28  ;;  %s32_s25 = int_to_ptr.vmem [resolvable:$true] %s31_s25 }
   0x5   :  { %p840_p1 = scmp.lt.u32.totalorder %s836_s28, %s1211_s1 }
   0x7   :  { %p842_p2 = pnand %p840_p1, %p837_p0 }
   0x9   :  { %845 = shalt.err (!%p842_p2)
}
   0xa   :  { %s846_s10 = scalar_lea.vmem %s32_s25, 512  ;;  %p851_p4 = scmp.lt.s32.totalorder %s32_s25, %s32_s25 }
   0xb   :  { %p847_p3 = scmp.ne.s32.totalorder %s32_s25, %s846_s10  ;;  %p852_p5 = scmp.lt.s32.totalorder %s846_s10, %s846_s10 }
   0xd   :  { %p853_p6 = por %p852_p5, %p851_p4 }
   0xf   :  { %p854_p7 = pnand %p853_p6, %p847_p3 }
  0x11   :  { %857 = shalt.err (!%p854_p7)
}
  0x12   :  { %s977_s11 = smov 64   ;;  %s978_s12 = smov 4  }
  0x13   :  { %37 = dma.hbm_to_vmem [thread:$0]  %s1211_s1, 512, %s32_s25, [#allocation6], %s977_s11, %s977_s11, %s978_s12  }
  0x14   :  { %s979_s15 = smov [#allocation8]   ;;  %s858_s19 = scalar_lea.hbm %s1213_s3, 512 }
  0x15   :  { %s55_s16 = sshll.u32 %s979_s15, 4  ;;  %p859_p8 = scmp.ne.s32.totalorder %s1213_s3, %s858_s19  ;;  %s56_s16 = int_to_ptr.vmem [resolvable:$true] %s55_s16 }
  0x16   :  { %p862_p9 = scmp.lt.u32.totalorder %s858_s19, %s1213_s3 }
  0x18   :  { %p864_p10 = pnand %p862_p9, %p859_p8 }
  0x1a   :  { %867 = shalt.err (!%p864_p10)
}
  0x1b   :  { %s868_s24 = scalar_lea.vmem %s56_s16, 512  ;;  %p873_p12 = scmp.lt.s32.totalorder %s56_s16, %s56_s16 }
  0x1c   :  { %p869_p11 = scmp.ne.s32.totalorder %s56_s16, %s868_s24  ;;  %p874_p13 = scmp.lt.s32.totalorder %s868_s24, %s868_s24 }
  0x1e   :  { %p875_p0 = por %p874_p13, %p873_p12 }
  0x20   :  { %p876_p1 = pnand %p875_p0, %p869_p11 }
  0x22   :  { %879 = shalt.err (!%p876_p1)
}
  0x23   :  { %s980_s1 = smov 128   ;;  %s981_s25 = smov 8  }
  0x24   :  { %61 = dma.hbm_to_vmem [thread:$0]  %s1213_s3, 512, %s56_s16, [#allocation9], %s980_s1, %s980_s1, %s981_s25  }
  0x25   :  { %s982_s28 = smov [#allocation2]   ;;  %s983_s30 = smov [#allocation7]  }
  0x26   :  { %s22_s29 = sshll.u32 %s982_s28, 4  ;;  %s43_s8 = sshll.u32 %s983_s30, 4  ;;  %s23_s29 = int_to_ptr.vmem [resolvable:$true] %s22_s29  ;;  %s1062_s8 = int_to_ptr.vmem [resolvable:$true] %s43_s8 }
  0x27   :  { %s880_s13 = scalar_lea.hbm %s1210_s0, 128 }
  0x28   :  { %p881_p2 = scmp.ne.s32.totalorder %s1210_s0, %s880_s13  ;;  %p884_p3 = scmp.lt.u32.totalorder %s880_s13, %s1210_s0 }
  0x2a   :  { %p886_p4 = pnand %p884_p3, %p881_p2 }
  0x2c   :  { %889 = shalt.err (!%p886_p4)
}
  0x2d   :  { %s890_s3 = scalar_lea.vmem %s23_s29, 128  ;;  %p895_p6 = scmp.lt.s32.totalorder %s23_s29, %s23_s29 }
  0x2e   :  { %p891_p5 = scmp.ne.s32.totalorder %s23_s29, %s890_s3  ;;  %p896_p7 = scmp.lt.s32.totalorder %s890_s3, %s890_s3 }
  0x30   :  { %p897_p8 = por %p896_p7, %p895_p6 }
  0x32   :  { %p898_p9 = pnand %p897_p8, %p891_p5 }
  0x34   :  { %901 = shalt.err (!%p898_p9)
}
  0x35   :  { %25 = dma.hbm_to_vmem [thread:$0]  %s1210_s0, 128, %s23_s29, [#allocation3]  }
  0x36   :  { %s902_s22 = scalar_lea.hbm %s1212_s2, 512 }
  0x37   :  { %p903_p10 = scmp.ne.s32.totalorder %s1212_s2, %s902_s22  ;;  %p906_p11 = scmp.lt.u32.totalorder %s902_s22, %s1212_s2 }
  0x39   :  { %p908_p12 = pnand %p906_p11, %p903_p10 }
  0x3b   :  { %911 = shalt.err (!%p908_p12)
}
  0x3c   :  { %s912_s28 = scalar_lea.vmem %s1062_s8, 512  ;;  %p917_p0 = scmp.lt.s32.totalorder %s1062_s8, %s1062_s8 }
  0x3d   :  { %p913_p13 = scmp.ne.s32.totalorder %s1062_s8, %s912_s28  ;;  %p918_p1 = scmp.lt.s32.totalorder %s912_s28, %s912_s28 }
  0x3f   :  { %p919_p2 = por %p918_p1, %p917_p0 }
  0x41   :  { %p920_p3 = pnand %p919_p2, %p913_p13 }
  0x43   :  { %923 = shalt.err (!%p920_p3)
}
  0x44   :  { %49 = dma.hbm_to_vmem [thread:$0]  %s1212_s2, 512, %s1062_s8, [#allocation6], %s977_s11, %s977_s11, %s978_s12  }
  0x45   :  { %s984_s30 = smov [#allocation10]   ;;  %s924_s14 = scalar_lea.hbm %s1215_s5, 512 }
  0x46   :  { %s69_s9 = sshll.u32 %s984_s30, 4  ;;  %p925_p4 = scmp.ne.s32.totalorder %s1215_s5, %s924_s14  ;;  %s70_s9 = int_to_ptr.vmem [resolvable:$true] %s69_s9 }
  0x47   :  { %p928_p5 = scmp.lt.u32.totalorder %s924_s14, %s1215_s5 }
  0x49   :  { %p930_p6 = pnand %p928_p5, %p925_p4 }
  0x4b   :  { %933 = shalt.err (!%p930_p6)
}
  0x4c   :  { %s934_s16 = scalar_lea.vmem %s70_s9, 512  ;;  %p939_p8 = scmp.lt.s32.totalorder %s70_s9, %s70_s9 }
  0x4d   :  { %p935_p7 = scmp.ne.s32.totalorder %s70_s9, %s934_s16  ;;  %p940_p9 = scmp.lt.s32.totalorder %s934_s16, %s934_s16 }
  0x4f   :  { %p941_p10 = por %p940_p9, %p939_p8 }
  0x51   :  { %p942_p11 = pnand %p941_p10, %p935_p7 }
  0x53   :  { %945 = shalt.err (!%p942_p11)
}
  0x54   :  { %75 = dma.hbm_to_vmem [thread:$0]  %s1215_s5, 512, %s70_s9, [#allocation9], %s980_s1, %s980_s1, %s981_s25  }
  0x55   :  { %968 = dma.done.wait [#allocation3], 128  }
  0x56   :  { %969 = vsyncadd [#allocation3], 4294967168 }
  0x57   :  { %970 = dma.done.wait [#allocation6], 1024  }
  0x58   :  { %971 = vsyncadd [#allocation6], 4294966272 }
  0x59   :  { %972 = dma.done.wait [#allocation9], 1024  }
  0x5a   :  { %973 = vsyncadd [#allocation9], 4294966272  ;;  %v985_v0 = vmov 0.0|0.0   ;;  %vm986_vm0 = vmmov 0   ;;  %v987_v1 = vmov 0.0   ;;  %v110_v2 = vld [vmem:[#allocation8] sm:$0xff]  ;;  %v417_v29 = vlaneseq }
  0x5b   :  { %762 = vmatprep.subr.bf16.mxu0 %v985_v0  ;;  %745 = vmatprep.mubr.msk.f32.mxu0 %vm986_vm0, %v987_v1  ;;  %v111_v3 = vld [vmem:[#allocation8 + $0x8] sm:$0xff]  ;;  %v203_v4 = vld [vmem:[#allocation10] sm:$0xff]  ;;  %v112_v7 = vld [vmem:[#allocation8 + $0x10] sm:$0xff]  ;;  %vm121_vm1 = vcmask 261120   ;;  %s988_s5 = smov 96   ;;  %vm324_vm2 = vcmask 1043456  }
  0x5c   :  { %v763_v5 = vpack.c.bf16 %v111_v3, %v110_v2  ;;  %v204_v6 = vld [vmem:[#allocation10 + $0x8] sm:$0xff]  ;;  %v113_v8 = vld [vmem:[#allocation8 + $0x18] sm:$0xff]  ;;  %v205_v10 = vld [vmem:[#allocation10 + $0x10] sm:$0xff]  ;;  %v989_v27 = vmov 1966171168   ;;  %v418_v31 = vshrl.u32 %v417_v29, 7 }
  0x5d   :  { %v768_v9 = vpack.c.bf16 %v204_v6, %v203_v4  ;;  %v206_v11 = vld [vmem:[#allocation10 + $0x18] sm:$0xff]  ;;  %v766_v12 = vpack.c.bf16 %v113_v8, %v112_v7  ;;  %v792_v14 = vld [vmem:[#allocation5] sm:$0xff]   ;;  %v104_v17 = vld [vmem:[#allocation7 + $0x8] sm:$0xf]  ;;  %v415_v28 = vunpack.c.l.s4 %v989_v27  ;;  %vm389_vm3 = vcmask 1041409  }
  0x5e   :  { %764 = vmatpush3.bf16.msra.mxu0 %v763_v5  ;;  %v772_v13 = vpack.c.bf16 %v206_v11, %v205_v10  ;;  %756 = vmatprep.mubr.msk.f32.mxu1 %vm121_vm1, %v792_v14  ;;  %v93_v15 = vld [vmem:[#allocation2] sm:$0xff]  ;;  %v102_v16 = vld [vmem:[#allocation7] sm:$0xf]  ;;  %v793_v18 = vld [vmem:[#allocation5 + $0x8] sm:$0xff]   ;;  %v1133_v50 = vsub.s32 0, %v418_v31  ;;  %vm391_vm4 = vcmask 1042434  }
  0x5f   :  { %769 = vmatprep.subr.bf16.mxu1 %v768_v9  ;;  %765 = vmatprep.subr.bf16.mxu0 %v985_v0  ;;  %v794_v19 = vld [vmem:[#allocation5 + $0x10] sm:$0xff]   ;;  %v103_v20 = vld [vmem:[#allocation7 + $0x4] sm:$0xf]  ;;  %v105_v21 = vld [vmem:[#allocation7 + $0xc] sm:$0xf]  ;;  %v416_v30 = vunpack.c.0.s8 %v415_v28  ;;  %vm393_vm5 = vcmask 1043459  }
  0x60   :  { %771 = vmatpush3.bf16.msra.mxu1 %v768_v9  ;;  %566 = vrot.lane.b32.xlu0 %v102_v16, %s988_s5  ;;  %v795_v22 = vld [vmem:[#allocation5 + $0x18] sm:$0xff]   ;;  %v106_v23 = vld [vmem:[#allocation7 + $0x10] sm:$0xf]  ;;  %v107_v24 = vld [vmem:[#allocation7 + $0x14] sm:$0xf]  ;;  %vm395_vm6 = vcmask 1044484  }
  0x61   :  { %773 = vmatprep.subr.bf16.mxu1 %v772_v13  ;;  %570 = vrot.lane.b32.xlu1 %v104_v17, %s988_s5  ;;  %v108_v25 = vld [vmem:[#allocation7 + $0x18] sm:$0xf]  ;;  %v109_v26 = vld [vmem:[#allocation7 + $0x1c] sm:$0xf]  ;;  %v1122_v36 = vsub.s32 %v416_v30, %v418_v31  ;;  %vm397_vm7 = vcmask 1045509   ;;  %vm399_vm8 = vcmask 1046534  }
  0x62   :  { %767 = vmatpush3.bf16.msra.mxu0 %v766_v12  ;;  %v708_v32 = vld [vmem:[%s1214_s4] ss:$0 sm:$0xff]  ;;  %vm401_vm9 = vcmask 1047559   ;;  %vm598_vm10 = vcmask 1044224   ;;  %s990_s4 = smov 32   ;;  %vm686_vm11 = vcmask 523264  }
  0x63   :  { %v710_v34 = vld [vmem:[%s1216_s6] ss:$0 sm:$0xff]  ;;  %s991_s6 = smov [#allocation11]   ;;  %vm688_vm12 = vcmask 785408  }
  0x64   :  { %775 = vmatpush3.bf16.msra.mxu1 %v772_v13  ;;  %568 = vrot.lane.b32.xlu0 %v103_v20, %s988_s5 }
  0x65   :  { %746 = vmatmul.mubr.msk.f32.vlgmr.msra.gmra.mrb[0].mxu0 %vm121_vm1, %v93_v15  ;;  %572 = vrot.lane.b32.xlu1 %v105_v21, %s988_s5 }
  0x67   :  { %757 = vmatmul.mubr.msk.f32.vlgmr.msra.gmra.mrb[0].mxu1 %vm121_vm1, %v793_v18 }
  0x68   :  { %759 = vmatprep.mubr.msk.f32.mxu1 %vm121_vm1, %v794_v19  ;;  %574 = vrot.lane.b32.xlu0 %v106_v23, %s988_s5 }
  0x69   :  { %576 = vrot.lane.b32.xlu1 %v107_v24, %s988_s5 }
  0x6b   :  { %760 = vmatmul.mubr.msk.f32.gmra.mrb[2].mxu1 %vm121_vm1, %v795_v22 }
  0x6c   :  { %578 = vrot.lane.b32.xlu0 %v108_v25, %s988_s5 }
  0x6d   :  { %580 = vrot.lane.b32.xlu1 %v109_v26, %s988_s5 }
 0x138   :  { %v191_v33 = vpop.f32.mrb[0].mxu0 }
 0x139   :  { %v192_v35 = vadd.f32 %v708_v32, %v191_v33  ;;  %v747_v37 = vpop.f32.mrb[1].mxu0 }
 0x13a   :  { %v758_v38 = vpop.f32.mrb[0].mxu1 }
 0x13b   :  { %v1124_v39 = vadd.f32 %v710_v34, %v192_v35  ;;  %v317_v40 = vcombine.high %v758_v38, %v758_v38  ;;  %v339_v41 = vsel %vm324_vm2, %v758_v38, 0.0  ;;  %v293_v42 = vpop.f32.mrb[1].mxu1 }
 0x13c   :  { %v340_v43 = vrot.slane %v339_v41, 4  ;;  %v316_v44 = vcombine.high %v293_v42, %v293_v42  ;;  %v325_v45 = vsel %vm324_vm2, %v293_v42, 0.0 }
 0x13d   :  { %v413_v46 = vcombine.high %v1124_v39, %v1124_v39  ;;  %v420_v47 = vrot.slane %v1124_v39, %v1122_v36  ;;  %v346_v48 = vsel %vm324_vm2, %v317_v40, 0.0  ;;  %v326_v49 = vrot.slane %v325_v45, 4 }
 0x13e   :  { %v341_v51 = vadd.f32 %v340_v43, %v339_v41  ;;  %v347_v52 = vrot.slane %v346_v48, 4  ;;  %v332_v53 = vsel %vm324_vm2, %v316_v44, 0.0  ;;  %v1136_v54 = vpop.f32.mrb[2].mxu1 }
 0x13f   :  { %v427_v55 = vrot.slane %v413_v46, %v1122_v36  ;;  %v428_v56 = vcombine.high %v420_v47, %v420_v47  ;;  %v436_v57 = vrot.slane %v420_v47, %v1122_v36  ;;  %v327_v58 = vadd.f32 %v326_v49, %v325_v45  ;;  %v1140_v59 = vpop.f32.mrb[3].mxu1 }
 0x140   :  { %v342_v60 = vrot.slane %v341_v51, 2  ;;  %v348_v61 = vadd.f32 %v347_v52, %v346_v48  ;;  %v333_v62 = vrot.slane %v332_v53, 4  ;;  %v1144_v63 = vcombine.high %v1136_v54, %v1136_v54 }
 0x141   :  { %v429_v0 = vcombine.high %v427_v55, %v427_v55  ;;  %v450_v1 = vrot.slane %v428_v56, %v1122_v36  ;;  %v458_v2 = vcombine.high %v436_v57, %v436_v57  ;;  %v328_v3 = vrot.slane %v327_v58, 2 }
 0x142   :  { %v343_v4 = vadd.f32 %v342_v60, %v341_v51  ;;  %v349_v5 = vrot.slane %v348_v61, 2  ;;  %v334_v6 = vadd.f32 %v333_v62, %v332_v53  ;;  %v465_v7 = vrot.slane %v436_v57, %v1133_v50 }
 0x143   :  { %v460_v8 = vcombine.high %v450_v1, %v450_v1  ;;  %v473_v9 = vrot.slane %v458_v2, %v1133_v50  ;;  %v329_v10 = vadd.f32 %v328_v3, %v327_v58  ;;  %v469_v11 = vrot.slane %v450_v1, %v1133_v50 }
 0x144   :  { %v344_v12 = vrot.slane %v343_v4, 1  ;;  %v350_v13 = vadd.f32 %v349_v5, %v348_v61  ;;  %v335_v14 = vrot.slane %v334_v6, 2  ;;  %v502_v15 = vadd.f32 %v465_v7, %v293_v42 }
 0x145   :  { %v477_v16 = vrot.slane %v460_v8, %v1133_v50  ;;  %v504_v17 = vadd.f32 %v758_v38, %v473_v9  ;;  %v330_v18 = vrot.slane %v329_v10, 1  ;;  %v503_v19 = vadd.f32 %v469_v11, %v316_v44 }
 0x146   :  { %v345_v20 = vadd.f32 %v344_v12, %v343_v4  ;;  %v351_v21 = vrot.slane %v350_v13, 1  ;;  %v336_v22 = vadd.f32 %v335_v14, %v334_v6  ;;  %v716_v23 = vmul.f32 -1.442695, %v502_v15 }
 0x147   :  { %v505_v24 = vadd.f32 %v477_v16, %v317_v40  ;;  %v718_v25 = vmul.f32 -1.442695, %v504_v17  ;;  %v331_v26 = vadd.f32 %v330_v18, %v329_v10  ;;  %v717_v27 = vmul.f32 -1.442695, %v503_v19 }
 0x148   :  { %v352_v28 = vadd.f32 %v351_v21, %v350_v13  ;;  %v337_v29 = vrot.slane %v336_v22, 1  ;;  %796 = vpow2.f32 %v716_v23  ;;  %v367_v30 = vsel %vm324_vm2, %v1136_v54, 0.0  ;;  %v567_v21 = vpop.permute.xlu0 %566 }
 0x149   :  { %798 = vpow2.f32 %v718_v25  ;;  %v719_v31 = vmul.f32 -1.442695, %v505_v24  ;;  %v368_v32 = vrot.slane %v367_v30, 4  ;;  %v374_v33 = vsel %vm324_vm2, %v1144_v63, 0.0 }
 0x14a   :  { %v338_v34 = vadd.f32 %v337_v29, %v336_v22  ;;  %800 = vpow2.f32 %v717_v27  ;;  %v375_v35 = vrot.slane %v374_v33, 4  ;;  %v443_v37 = vrot.slane %v427_v55, %v1122_v36 }
 0x14b   :  { %802 = vpow2.f32 %v719_v31  ;;  %v369_v38 = vadd.f32 %v368_v32, %v367_v30  ;;  %v457_v40 = vrot.slane %v429_v0, %v1122_v36  ;;  %v318_v41 = vcombine.high %v1140_v59, %v1140_v59 }
 0x14c   :  { %v390_v42 = vsel %vm389_vm3, %v338_v34, %v331_v26  ;;  %v376_v43 = vadd.f32 %v375_v35, %v374_v33  ;;  %v459_v44 = vcombine.high %v443_v37, %v443_v37  ;;  %v353_v45 = vsel %vm324_vm2, %v1140_v59, 0.0  ;;  %v569_v30 = vpop.permute.xlu0 %568 }
 0x14d   :  { %v392_v46 = vsel %vm391_vm4, %v345_v20, %v390_v42  ;;  %v461_v47 = vcombine.high %v457_v40, %v457_v40  ;;  %v354_v48 = vrot.slane %v353_v45, 4  ;;  %v360_v52 = vsel %vm324_vm2, %v318_v41, 0.0 }
 0x14e   :  { %v377_v49 = vrot.slane %v376_v43, 2  ;;  %v489_v51 = vrot.slane %v459_v44, %v1133_v50  ;;  %v394_v36 = vsel %vm393_vm5, %v352_v28, %v392_v46  ;;  %v370_v53 = vrot.slane %v369_v38, 2  ;;  %v571_v28 = vpop.permute.xlu1 %570 }
 0x14f   :  { %v493_v55 = vrot.slane %v461_v47, %v1133_v50  ;;  %v355_v56 = vadd.f32 %v354_v48, %v353_v45  ;;  %v361_v57 = vrot.slane %v360_v52, 4  ;;  %v481_v61 = vrot.slane %v443_v37, %v1133_v50 }
 0x150   :  { %v378_v58 = vadd.f32 %v377_v49, %v376_v43  ;;  %v508_v60 = vadd.f32 %v1136_v54, %v489_v51  ;;  %v485_v62 = vrot.slane %v457_v40, %v1133_v50  ;;  %v371_v9 = vadd.f32 %v370_v53, %v369_v38  ;;  %v575_v51 = vpop.permute.xlu0 %574 }
 0x151   :  { %v509_v0 = vadd.f32 %v493_v55, %v1144_v63  ;;  %v356_v1 = vrot.slane %v355_v56, 2  ;;  %v362_v2 = vadd.f32 %v361_v57, %v360_v52  ;;  %v506_v5 = vadd.f32 %v481_v61, %v1140_v59 }
 0x152   :  { %v797_v3 = vpop.eup %796  ;;  %v722_v4 = vmul.f32 -1.442695, %v508_v60  ;;  %v507_v6 = vadd.f32 %v485_v62, %v318_v41  ;;  %v379_v12 = vrot.slane %v378_v58, 1  ;;  %v372_v18 = vrot.slane %v371_v9, 1  ;;  %v573_v45 = vpop.permute.xlu1 %572 }
 0x153   :  { %v799_v7 = vpop.eup %798  ;;  %v534_v8 = vadd.f32 1.0, %v797_v3  ;;  %v357_v10 = vadd.f32 %v356_v1, %v355_v56  ;;  %v363_v13 = vrot.slane %v362_v2, 2  ;;  %v723_v63 = vmul.f32 -1.442695, %v509_v0 }
 0x154   :  { %v801_v11 = vpop.eup %800  ;;  %v536_v54 = vadd.f32 1.0, %v799_v7  ;;  %804 = vpow2.f32 %v722_v4  ;;  %v720_v59 = vmul.f32 -1.442695, %v506_v5  ;;  %v721_v20 = vmul.f32 -1.442695, %v507_v6 }
 0x155   :  { %v803_v50 = vpop.eup %802  ;;  %v535_v14 = vadd.f32 1.0, %v801_v11  ;;  %806 = vrcp.f32 %v534_v8  ;;  %v358_v15 = vrot.slane %v357_v10, 1  ;;  %v364_v17 = vadd.f32 %v363_v13, %v362_v2  ;;  %v579_v8 = vpop.permute.xlu0 %578 }
 0x156   :  { %v537_v16 = vadd.f32 1.0, %v803_v50  ;;  %808 = vrcp.f32 %v536_v54  ;;  %v380_v24 = vadd.f32 %v379_v12, %v378_v58  ;;  %v373_v26 = vadd.f32 %v372_v18, %v371_v9  ;;  %v577_v5 = vpop.permute.xlu1 %576 }
 0x157   :  { %810 = vrcp.f32 %v535_v14  ;;  %v359_v19 = vadd.f32 %v358_v15, %v357_v10  ;;  %v365_v22 = vrot.slane %v364_v17, 1 }
 0x158   :  { %812 = vrcp.f32 %v537_v16 }
 0x159   :  { %814 = vpow2.f32 %v723_v63  ;;  %v396_v23 = vsel %vm395_vm6, %v359_v19, %v394_v36  ;;  %v366_v25 = vadd.f32 %v365_v22, %v364_v17 }
 0x15a   :  { %816 = vpow2.f32 %v720_v59  ;;  %v581_v18 = vpop.permute.xlu1 %580 }
 0x15b   :  { %818 = vpow2.f32 %v721_v20  ;;  %v398_v27 = vsel %vm397_vm7, %v366_v25, %v396_v23 }
 0x15c   :  { %v400_v29 = vsel %vm399_vm8, %v373_v26, %v398_v27 }
 0x15d   :  { %v402_v32 = vsel %vm401_vm9, %v380_v24, %v400_v29 }
 0x15e   :  { %v805_v31 = vpop.eup %804  ;;  %v1177_v35 = vadd.f32 %v402_v32, %v1124_v39 }
 0x15f   :  { %v807_v33 = vpop.eup %806  ;;  %v540_v34 = vadd.f32 1.0, %v805_v31 }
 0x160   :  { %v809_v37 = vpop.eup %808  ;;  %v590_v38 = vmul.f32 %v807_v33, %v567_v21 }
 0x161   :  { %v811_v40 = vpop.eup %810  ;;  %820 = vrcp.f32 %v540_v34  ;;  %v592_v41 = vmul.f32 %v809_v37, %v571_v28 }
 0x162   :  { %v813_v42 = vpop.eup %812  ;;  %v599_v43 = vsel %vm598_vm10, %v590_v38, 0.0  ;;  %v591_v44 = vmul.f32 %v811_v40, %v569_v30  ;;  %822 = vtanh.f32 %v1177_v35 }
 0x163   :  { %v815_v46 = vpop.eup %814  ;;  %v600_v47 = vrot.slane %v599_v43, 4  ;;  %v613_v48 = vsel %vm598_vm10, %v592_v41, 0.0  ;;  %v593_v49 = vmul.f32 %v813_v42, %v573_v45 }
 0x164   :  { %v817_v39 = vpop.eup %816  ;;  %v541_v52 = vadd.f32 1.0, %v815_v46  ;;  %v614_v36 = vrot.slane %v613_v48, 4  ;;  %v606_v53 = vsel %vm598_vm10, %v591_v44, 0.0 }
 0x165   :  { %v819_v55 = vpop.eup %818  ;;  %v538_v56 = vadd.f32 1.0, %v817_v39  ;;  %v601_v57 = vadd.f32 %v600_v47, %v599_v43  ;;  %v607_v58 = vrot.slane %v606_v53, 4  ;;  %v620_v60 = vsel %vm598_vm10, %v593_v49, 0.0 }
 0x166   :  { %824 = vrcp.f32 %v541_v52  ;;  %v539_v61 = vadd.f32 1.0, %v819_v55  ;;  %v615_v62 = vadd.f32 %v614_v36, %v613_v48  ;;  %v621_v0 = vrot.slane %v620_v60, 4 }
 0x167   :  { %826 = vrcp.f32 %v538_v56  ;;  %v602_v1 = vrot.slane %v601_v57, 2  ;;  %v608_v2 = vadd.f32 %v607_v58, %v606_v53 }
 0x168   :  { %828 = vrcp.f32 %v539_v61  ;;  %v616_v3 = vrot.slane %v615_v62, 2  ;;  %v622_v4 = vadd.f32 %v621_v0, %v620_v60 }
 0x169   :  { %v603_v6 = vadd.f32 %v602_v1, %v601_v57  ;;  %v609_v7 = vrot.slane %v608_v2, 2 }
 0x16a   :  { %v617_v9 = vadd.f32 %v616_v3, %v615_v62  ;;  %v623_v10 = vrot.slane %v622_v4, 2  ;;  %v715_v3 = vmul.f32 -1.442695, %v1177_v35 }
 0x16b   :  { %v821_v11 = vpop.eup %820  ;;  %v604_v54 = vrot.slane %v603_v6, 1  ;;  %v610_v12 = vadd.f32 %v609_v7, %v608_v2 }
 0x16c   :  { %v823_v13 = vpop.eup %822  ;;  %v618_v50 = vrot.slane %v617_v9, 1  ;;  %v624_v14 = vadd.f32 %v623_v10, %v622_v4  ;;  %v596_v63 = vmul.f32 %v821_v11, %v579_v8  ;;  %830 = vpow2.f32 %v715_v3 }
 0x16d   :  { %v611_v15 = vrot.slane %v610_v12, 1  ;;  %656 = vrot.lane.b32.xlu0 %v823_v13, %s977_s11  ;;  %v605_v19 = vadd.f32 %v604_v54, %v603_v6  ;;  %s697_s11 = sshll.u32 %s991_s6, 4  ;;  %s698_s11 = int_to_ptr.vmem [resolvable:$true] %s697_s11 }
 0x16e   :  { %v619_v16 = vadd.f32 %v618_v50, %v617_v9  ;;  %v625_v17 = vrot.slane %v624_v14, 1  ;;  %v641_v59 = vsel %vm598_vm10, %v596_v63, 0.0  ;;  %s946_s20 = scalar_lea.vmem %s698_s11, 128  ;;  %p951_p13 = scmp.lt.s32.totalorder %s698_s11, %s698_s11 }
 0x16f   :  { %v612_v20 = vadd.f32 %v611_v15, %v610_v12  ;;  %v642_v21 = vrot.slane %v641_v59, 4  ;;  %p947_p12 = scmp.ne.s32.totalorder %s698_s11, %s946_s20  ;;  %p952_p0 = scmp.lt.s32.totalorder %s946_s20, %s946_s20 }
 0x170   :  { %v825_v22 = vpop.eup %824  ;;  %v626_v23 = vadd.f32 %v625_v17, %v624_v14 }
 0x171   :  { %v827_v24 = vpop.eup %826  ;;  %v668_v25 = vsel %vm389_vm3, %v612_v20, %v605_v19  ;;  %v643_v26 = vadd.f32 %v642_v21, %v641_v59  ;;  %v597_v27 = vmul.f32 %v825_v22, %v581_v18  ;;  %p953_p1 = por %p952_p0, %p951_p13 }
 0x172   :  { %v829_v28 = vpop.eup %828  ;;  %v594_v29 = vmul.f32 %v827_v24, %v575_v51  ;;  %v669_v30 = vsel %vm391_vm4, %v619_v16, %v668_v25 }
 0x173   :  { %v595_v31 = vmul.f32 %v829_v28, %v577_v5  ;;  %v648_v32 = vsel %vm598_vm10, %v597_v27, 0.0  ;;  %v670_v33 = vsel %vm393_vm5, %v626_v23, %v669_v30  ;;  %v644_v41 = vrot.slane %v643_v26, 2  ;;  %p954_p2 = pnand %p953_p1, %p947_p12 }
 0x174   :  { %v627_v34 = vsel %vm598_vm10, %v594_v29, 0.0  ;;  %v649_v37 = vrot.slane %v648_v32, 4 }
 0x175   :  { %v628_v38 = vrot.slane %v627_v34, 4  ;;  %v634_v40 = vsel %vm598_vm10, %v595_v31, 0.0  ;;  %v645_v48 = vadd.f32 %v644_v41, %v643_v26 }
 0x176   :  { %v635_v42 = vrot.slane %v634_v40, 4  ;;  %v650_v43 = vadd.f32 %v649_v37, %v648_v32  ;;  %v831_v4 = vpop.eup %830 }
 0x177   :  { %v629_v44 = vadd.f32 %v628_v38, %v627_v34  ;;  %v646_v53 = vrot.slane %v645_v48, 1  ;;  %v408_v5 = vadd.f32 1.0, %v831_v4 }
 0x178   :  { %v636_v45 = vadd.f32 %v635_v42, %v634_v40  ;;  %v651_v46 = vrot.slane %v650_v43, 2 }
 0x179   :  { %v630_v47 = vrot.slane %v629_v44, 2  ;;  %v647_v60 = vadd.f32 %v646_v53, %v645_v48  ;;  %832 = vrcp.f32 %v408_v5 }
 0x17a   :  { %v637_v49 = vrot.slane %v636_v45, 2  ;;  %v652_v51 = vadd.f32 %v651_v46, %v650_v43 }
 0x17b   :  { %v631_v39 = vadd.f32 %v630_v47, %v629_v44 }
 0x17c   :  { %v638_v52 = vadd.f32 %v637_v49, %v636_v45  ;;  %v653_v56 = vrot.slane %v652_v51, 1 }
 0x17d   :  { %v632_v36 = vrot.slane %v631_v39, 1 }
 0x17e   :  { %v639_v55 = vrot.slane %v638_v52, 1  ;;  %v654_v62 = vadd.f32 %v653_v56, %v652_v51 }
 0x17f   :  { %v633_v57 = vadd.f32 %v632_v36, %v631_v39 }
 0x180   :  { %v640_v58 = vadd.f32 %v639_v55, %v638_v52 }
 0x181   :  { %v671_v61 = vsel %vm395_vm6, %v633_v57, %v670_v33 }
 0x182   :  { %v672_v0 = vsel %vm397_vm7, %v640_v58, %v671_v61 }
 0x183   :  { %v673_v1 = vsel %vm399_vm8, %v647_v60, %v672_v0  ;;  %v833_v7 = vpop.eup %832 }
 0x184   :  { %v674_v2 = vsel %vm401_vm9, %v654_v62, %v673_v1 }
 0x185   :  { %675 = vrot.lane.b32.xlu1 %v674_v2, %s990_s4 }
 0x1df   :  { %v657_v6 = vpop.permute.xlu0 %656 }
 0x1e0   :  { %v659_v8 = vmul.f32 %v833_v7, %v657_v6 }
 0x1f7   :  { %v676_v9 = vpop.permute.xlu1 %675 }
 0x1f8   :  { %v678_v10 = vadd.f32 %v676_v9, %v659_v8 }
 0x1fa   :  { %834 = vtanh.f32 %v678_v10 }
 0x204   :  { %v835_v11 = vpop.eup %834 }
 0x205   :  { %681 = vrot.lane.b32.xlu0 %v835_v11, %s990_s4 }
 0x277   :  { %v682_v54 = vpop.permute.xlu0 %681 }
 0x278   :  { %v684_v12 = vmul.f32 %v833_v7, %v682_v54 }
 0x27a   :  { %v685_v35 = vsel %vm121_vm1, %v678_v10, %v684_v12 }
 0x27b   :  { %v687_v13 = vsel %vm686_vm11, %v685_v35, 0.0 }
 0x27c   :  { %v689_v50 = vsel %vm688_vm12, %v687_v13, 0.0 }
 0x27d   :  { %690 = vst [vmem:[#allocation11] sm:$0xff] %v689_v50 }
 0x27e   :  { %957 = shalt.err (!%p954_p2)
}
 0x27f   :  { %s958_s23 = scalar_lea.hbm %s1217_s7, 128 }
 0x280   :  { %p959_p3 = scmp.ne.s32.totalorder %s1217_s7, %s958_s23  ;;  %p962_p4 = scmp.lt.u32.totalorder %s958_s23, %s1217_s7 }
 0x282   :  { %p964_p5 = pnand %p962_p4, %p959_p3 }
 0x284   :  { %967 = shalt.err (!%p964_p5)
}
 0x285   :  { %700 = dma.vmem_to_hbm [thread:$0]  %s698_s11, 128, %s1217_s7, [#allocation4]  }
 0x286   :  { %974 = dma.done.wait [#allocation4], 128  }
 0x287   :  { %975 = vsyncadd [#allocation4], 4294967168 }
 0x288   :  { %704 = vsyncpa [#allocation3], 1 }
 0x289   :  { %705 = vsyncpa [#allocation6], 1 }
 0x28a   :  { %706 = vsyncpa [#allocation9], 1 }
 0x28b   :  { %707 = vsyncpa [#allocation4], 1 }

</bundles_post_ra>
